<compile_context>
chip_gen: v7x
topology: tpu7x:2x2x1
jax: 0.10.0
libtpu: 0.0.40
codegen_flags: <defaults>
</compile_context>

<pallas_src>
import functools

import jax
import jax.numpy as jnp
from jax.experimental import pallas as pl
from jax.experimental.pallas import tpu as pltpu

IN_FEATURES = 13
HIDDEN = 64
NUM_ACTIONS = 6
OUT_PADDED = 8          # layer-2 rows zero-padded 6 -> 8 (full sublane tile)


def _round_up(n: int, m: int) -> int:
    return ((n + m - 1) // m) * m


def _dqn_kernel(x_ref, w1_ref, b1_ref, w2_ref, b2_ref, out_ref):
    # x_ref  : (B_TILE, 13)  native batch-major tile (no wrapper transpose)
    # w1_ref : (64, 13)      b1_ref: (64, 1)
    # w2_ref : (8, 64)       b2_ref: (8, 1)   (rows 6..7 are zero padding)
    # out_ref: (8, B_TILE)   feature-major -> lane-dense, unmasked stores
    #
    # h[f, b] = sum_k w1[f, k] * x[b, k]   (contract over the feature axis;
    # equivalent to an RHS-transposed matmul, handled natively by the MXU)
    h = jax.lax.dot_general(
        w1_ref[...], x_ref[...],
        dimension_numbers=(((1,), (1,)), ((), ())),
        preferred_element_type=jnp.float32)
    h = jnp.maximum(h + b1_ref[...], 0.0)                       # (64, B_TILE) f32
    o = jnp.dot(w2_ref[...], h, preferred_element_type=jnp.float32)
    out_ref[...] = (o + b2_ref[...]).astype(out_ref.dtype)      # (8, B_TILE)


def prepare_params(w1, b1, w2, b2):
    """One-time parameter prep (do NOT call per forward step).

    Keeps the PyTorch (out_features, in_features) weight layout (already the
    correct LHS for the feature-major matmuls), makes biases column vectors,
    and zero-pads the second layer 6 -> 8 output rows for full-vreg stores.
    """
    w1 = jnp.asarray(w1, jnp.float32)                           # (64, 13)
    b1 = jnp.asarray(b1, jnp.float32).reshape(HIDDEN, 1)        # (64, 1)
    w2 = jnp.asarray(w2, jnp.float32)                           # (6, 64)
    b2 = jnp.asarray(b2, jnp.float32).reshape(NUM_ACTIONS, 1)   # (6, 1)
    pad = OUT_PADDED - NUM_ACTIONS
    w2 = jnp.pad(w2, ((0, pad), (0, 0)))                        # (8, 64)
    b2 = jnp.pad(b2, ((0, pad), (0, 0)))                        # (8, 1)
    return w1, b1, w2, b2


def _default_b_tile(B: int) -> int:
    # Large tiles so per-step overhead (~0.35 us) is amortized; capped at
    # 16384 lanes (f32 hidden intermediate + double-buffered x/out stay well
    # under the 32 MiB scoped-VMEM default on v5e/v6e/v7x) and at ceil(B/2)
    # so both v7x TensorCores get at least one "parallel" grid step.
    return min(16384, _round_up(pl.cdiv(B, 2), 128))


@functools.partial(
    jax.jit,
    static_argnames=("b_tile", "feature_major_output", "allow_xla_fallback"))
def dqn_forward(x, w1, b1_col, w2_pad, b2_pad, *, b_tile=None,
                feature_major_output=False, allow_xla_fallback=False):
    """relu(x @ W1.T + b1) @ W2.T + b2 as one fused Pallas kernel.

    Args:
      x:       (B, 13) float32 or bfloat16, native batch-major layout.
      w1:      (64, 13), b1_col: (64, 1)           (from prepare_params)
      w2_pad:  (8, 64),  b2_pad: (8, 1) zero-padded (from prepare_params)
      b_tile:  optional batch tile; must be a multiple of 128 (or >= B).
               None -> auto (>=2 grid steps when possible, <=16384 lanes).
      feature_major_output: if True return (6, B) and skip the final transpose
               (useful when the consumer reduces over actions anyway).
      allow_xla_fallback: if True, tiny batches (B < 512) use a plain fused
               XLA matmul (that regime is launch-overhead bound).
    Returns:
      (B, 6) float32   (or (6, B) float32 if feature_major_output).
    """
    B = x.shape[0]

    if allow_xla_fallback and B < 512:
        h = jnp.maximum(jnp.dot(x.astype(jnp.float32), w1.T) + b1_col[:, 0], 0.0)
        o = jnp.dot(h, w2_pad.T) + b2_pad[:, 0]
        o = o[:, :NUM_ACTIONS]
        return o.T if feature_major_output else o

    if b_tile is None:
        b_tile = _default_b_tile(B)
    b_tile = min(b_tile, B)                 # single exact block when B < tile
    grid = (pl.cdiv(B, b_tile),)

    # Weights follow x's dtype for the first (HBM-dominant) MXU pass; biases
    # and the tiny resident second layer stay f32 for the f32 epilogue.
    w1c = w1.astype(x.dtype)

    out_t = pl.pallas_call(
        _dqn_kernel,
        out_shape=jax.ShapeDtypeStruct((OUT_PADDED, B), jnp.float32),
        grid=grid,
        in_specs=[
            pl.BlockSpec((b_tile, IN_FEATURES), lambda i: (i, 0)),   # streamed x
            pl.BlockSpec((HIDDEN, IN_FEATURES), lambda i: (0, 0)),   # resident W1
            pl.BlockSpec((HIDDEN, 1), lambda i: (0, 0)),             # resident b1
            pl.BlockSpec((OUT_PADDED, HIDDEN), lambda i: (0, 0)),    # resident W2
            pl.BlockSpec((OUT_PADDED, 1), lambda i: (0, 0)),         # resident b2
        ],
        out_specs=pl.BlockSpec((OUT_PADDED, b_tile), lambda i: (0, i)),
        compiler_params=pltpu.CompilerParams(
            dimension_semantics=("parallel",)),      # megacore split on v7x
        cost_estimate=pl.CostEstimate(
            flops=2 * B * (IN_FEATURES * HIDDEN + HIDDEN * OUT_PADDED),
            transcendentals=0,
            bytes_accessed=B * (IN_FEATURES * x.dtype.itemsize + OUT_PADDED * 4)
                           + (HIDDEN * (IN_FEATURES + 1)
                              + OUT_PADDED * (HIDDEN + 1)) * 4),
    )(x, w1c, b1_col, w2_pad, b2_pad)

    q_fm = out_t[:NUM_ACTIONS, :]                    # drop the 2 pad rows
    return q_fm if feature_major_output else jnp.transpose(q_fm)


def init_params(key):
    """Deterministic init mimicking PyTorch nn.Linear default
    (uniform(-1/sqrt(fan_in), 1/sqrt(fan_in)))."""
    k1, k2, k3, k4 = jax.random.split(key, 4)
    bound1 = 1.0 / (IN_FEATURES ** 0.5)
    bound2 = 1.0 / (HIDDEN ** 0.5)
    w1 = jax.random.uniform(k1, (HIDDEN, IN_FEATURES), jnp.float32, -bound1, bound1)
    b1 = jax.random.uniform(k2, (HIDDEN,), jnp.float32, -bound1, bound1)
    w2 = jax.random.uniform(k3, (NUM_ACTIONS, HIDDEN), jnp.float32, -bound2, bound2)
    b2 = jax.random.uniform(k4, (NUM_ACTIONS,), jnp.float32, -bound2, bound2)
    return w1, b1, w2, b2


def _reference(x, w1, b1, w2, b2):
    return jnp.maximum(x @ w1.T + b1, 0.0) @ w2.T + b2


if __name__ == "__main__":
    key = jax.random.PRNGKey(0)
    kx, kx2, kp = jax.random.split(key, 3)

    w1, b1, w2, b2 = init_params(kp)
    params = prepare_params(w1, b1, w2, b2)

    # Small batch (module-spec shape): single exact block, no padding anywhere.
    B = 2
    x = jax.random.normal(kx, (B, IN_FEATURES), jnp.float32)
    out = jax.block_until_ready(dqn_forward(x, *params))
    ref = _reference(x, w1, b1, w2, b2)
    assert out.shape == (B, NUM_ACTIONS)
    assert jnp.allclose(out, ref, atol=1e-5, rtol=1e-5)

    # Ragged larger batch: multi-step grid + partial final tile (no jnp.pad).
    B2 = 1000
    x2 = jax.random.normal(kx2, (B2, IN_FEATURES), jnp.float32)
    out2 = jax.block_until_ready(dqn_forward(x2, *params, b_tile=256))
    ref2 = _reference(x2, w1, b1, w2, b2)
    assert out2.shape == (B2, NUM_ACTIONS)
    assert jnp.allclose(out2, ref2, atol=1e-4, rtol=1e-5)

    # Feature-major output path (skips the final transpose entirely).
    out2_fm = jax.block_until_ready(
        dqn_forward(x2, *params, b_tile=256, feature_major_output=True))
    assert out2_fm.shape == (NUM_ACTIONS, B2)
    assert jnp.allclose(out2_fm, ref2.T, atol=1e-4, rtol=1e-5)

    # bf16 activation path (halves x HBM traffic; f32 accumulation/epilogue).
    out2_bf = jax.block_until_ready(
        dqn_forward(x2.astype(jnp.bfloat16), *params, b_tile=256))
    assert out2_bf.shape == (B2, NUM_ACTIONS)
    assert jnp.allclose(out2_bf, ref2, atol=5e-2, rtol=5e-2)

    # Tiny-batch plain-XLA fallback path.
    out_fb = jax.block_until_ready(dqn_forward(x, *params, allow_xla_fallback=True))
    assert jnp.allclose(out_fb, ref, atol=1e-5, rtol=1e-5)

    print("KERNEL_OK")
</pallas_src>

<mosaic_0001>
module attributes {stable_mosaic.version = 11 : i64} {
  func.func @_dqn_kernel(%arg0: i32, %arg1: memref<2x13xf32, #tpu.memory_space<vmem>>, %arg2: memref<64x13xf32, #tpu.memory_space<vmem>>, %arg3: memref<64x1xf32, #tpu.memory_space<vmem>>, %arg4: memref<8x64xf32, #tpu.memory_space<vmem>>, %arg5: memref<8x1xf32, #tpu.memory_space<vmem>>, %arg6: memref<8x2xf32, #tpu.memory_space<vmem>>) attributes {dimension_semantics = [#tpu.dimension_semantics<parallel>], iteration_bounds = array<i64: 1>, scalar_prefetch = 0 : i64, scratch_operands = 0 : i64, tpu.core_type = #tpu.core_type<tc>, window_params = [{transform_indices = @transform_0, window_bounds = array<i64: 2, 13>}, {pipeline_mode = #tpu.pipeline_mode<synchronous>, transform_indices = @transform_1, window_bounds = array<i64: 64, 13>}, {pipeline_mode = #tpu.pipeline_mode<synchronous>, transform_indices = @transform_2, window_bounds = array<i64: 64, 1>}, {pipeline_mode = #tpu.pipeline_mode<synchronous>, transform_indices = @transform_3, window_bounds = array<i64: 8, 64>}, {pipeline_mode = #tpu.pipeline_mode<synchronous>, transform_indices = @transform_4, window_bounds = array<i64: 8, 1>}, {transform_indices = @transform_5, window_bounds = array<i64: 8, 2>}]} {
    %c0 = arith.constant 0 : index
    %c0_0 = arith.constant 0 : index
    %0 = vector.load %arg2[%c0, %c0_0] : memref<64x13xf32, #tpu.memory_space<vmem>>, vector<64x13xf32>
    %c0_1 = arith.constant 0 : index
    %c0_2 = arith.constant 0 : index
    %1 = vector.load %arg1[%c0_1, %c0_2] : memref<2x13xf32, #tpu.memory_space<vmem>>, vector<2x13xf32>
    %cst = arith.constant dense<0.000000e+00> : vector<64x2xf32>
    %2 = tpu.matmul %0, %1, %cst {dimension_numbers = #tpu.dot_dimension_numbers<[1], [1], [0], [0], [0, 0, 1, 0], [], []>} : vector<64x13xf32>, vector<2x13xf32>, vector<64x2xf32> -> vector<64x2xf32>
    %c0_3 = arith.constant 0 : index
    %c0_4 = arith.constant 0 : index
    %3 = vector.load %arg3[%c0_3, %c0_4] : memref<64x1xf32, #tpu.memory_space<vmem>>, vector<64x1xf32>
    %4 = vector.broadcast %3 : vector<64x1xf32> to vector<64x2xf32>
    %5 = arith.addf %2, %4 : vector<64x2xf32>
    %cst_5 = arith.constant 0.000000e+00 : f32
    %6 = vector.broadcast %cst_5 : f32 to vector<64x2xf32>
    %7 = arith.maximumf %5, %6 : vector<64x2xf32>
    %c0_6 = arith.constant 0 : index
    %c0_7 = arith.constant 0 : index
    %8 = vector.load %arg4[%c0_6, %c0_7] : memref<8x64xf32, #tpu.memory_space<vmem>>, vector<8x64xf32>
    %cst_8 = arith.constant dense<0.000000e+00> : vector<8x2xf32>
    %9 = tpu.matmul %8, %7, %cst_8 {dimension_numbers = #tpu.dot_dimension_numbers<[1], [0], [0], [1], [0, 0, 1, 1], [], []>} : vector<8x64xf32>, vector<64x2xf32>, vector<8x2xf32> -> vector<8x2xf32>
    %c0_9 = arith.constant 0 : index
    %c0_10 = arith.constant 0 : index
    %10 = vector.load %arg5[%c0_9, %c0_10] : memref<8x1xf32, #tpu.memory_space<vmem>>, vector<8x1xf32>
    %11 = vector.broadcast %10 : vector<8x1xf32> to vector<8x2xf32>
    %12 = arith.addf %9, %11 : vector<8x2xf32>
    %c0_11 = arith.constant 0 : index
    %c0_12 = arith.constant 0 : index
    %13 = vector.load %arg6[%c0_11, %c0_12] : memref<8x2xf32, #tpu.memory_space<vmem>>, vector<8x2xf32>
    tpu.vector_store %arg6[%c0_11, %c0_12], %12 {strides = array<i32>} : memref<8x2xf32, #tpu.memory_space<vmem>>, vector<8x2xf32>,
    return
  }
  func.func @transform_0(%arg0: i32) -> (i32, i32) {
    %c0_i32 = arith.constant 0 : i32
    %c0_i32_0 = arith.constant 0 : i32
    return %arg0, %c0_i32 : i32, i32
  }
  func.func @transform_1(%arg0: i32) -> (i32, i32) {
    %c0_i32 = arith.constant 0 : i32
    %c0_i32_0 = arith.constant 0 : i32
    %c0_i32_1 = arith.constant 0 : i32
    return %c0_i32, %c0_i32_0 : i32, i32
  }
  func.func @transform_2(%arg0: i32) -> (i32, i32) {
    %c0_i32 = arith.constant 0 : i32
    %c0_i32_0 = arith.constant 0 : i32
    %c0_i32_1 = arith.constant 0 : i32
    return %c0_i32, %c0_i32_0 : i32, i32
  }
  func.func @transform_3(%arg0: i32) -> (i32, i32) {
    %c0_i32 = arith.constant 0 : i32
    %c0_i32_0 = arith.constant 0 : i32
    %c0_i32_1 = arith.constant 0 : i32
    return %c0_i32, %c0_i32_0 : i32, i32
  }
  func.func @transform_4(%arg0: i32) -> (i32, i32) {
    %c0_i32 = arith.constant 0 : i32
    %c0_i32_0 = arith.constant 0 : i32
    %c0_i32_1 = arith.constant 0 : i32
    return %c0_i32, %c0_i32_0 : i32, i32
  }
  func.func @transform_5(%arg0: i32) -> (i32, i32) {
    %c0_i32 = arith.constant 0 : i32
    %c0_i32_0 = arith.constant 0 : i32
    return %c0_i32, %arg0 : i32, i32
  }
}

</mosaic_0001>

<bundles_post_ra>
// kernel: dqn_forward.1
= control target key start
LH: loop header
LB: loop body
LE: loop exit
PB: predicated region body
PF: predicated region fallthrough
CT: control target
= control target key end

     0   :  { %vm77_vm0 = vcmask 105472   ;;  %v384_v2 = vmov 0   ;;  %v385_v19 = vmov 0.0|0.0   ;;  %vm386_vm1 = vmmov 0   ;;  %s488_s0 = inlined_call_operand.vmem [shape: f32[2,13], index: 0, kind: input, shape index: {}]   ;;  %s489_s1 = inlined_call_operand.vmem [shape: f32[64,13], index: 1, kind: input, shape index: {}]   ;;  %s490_s2 = inlined_call_operand.vmem [shape: f32[64,1], index: 2, kind: input, shape index: {}]   ;;  %s491_s4 = inlined_call_operand.vmem [shape: f32[8,1], index: 4, kind: input, shape index: {}]   ;;  %s492_s3 = inlined_call_operand.vmem [shape: f32[8,64], index: 3, kind: input, shape index: {}]   ;;  %s493_s5 = inlined_call_operand.vmem [shape: f32[8,2], index: 5, kind: output, shape index: {}]  }
   0x1   :  { %v28_v0 = vld [vmem:[%s488_s0] sm:$0x3]  ;;  %382 = vset.pattern.permute.xlu0 %v384_v2  ;;  %383 = vset.pattern.permute.xlu1 %v384_v2  ;;  %v21_v3 = vld [vmem:[%s489_s1 + $0x8] sm:$0xff]  ;;  %v22_v4 = vld [vmem:[%s489_s1 + $0x10] sm:$0xff]  ;;  %v387_v20 = vmov 0.0   ;;  %vm225_vm2 = vcmask 523264  }
   0x2   :  { %v20_v1 = vld [vmem:[%s489_s1] sm:$0xff]  ;;  %333 = vmatprep.subr.msk.mxu0 %vm77_vm0, %v28_v0  ;;  %v31_v6 = vld [vmem:[%s490_s2 + $0x10] sm:$0xff]  ;;  %v30_v7 = vld [vmem:[%s490_s2 + $0x8] sm:$0xff]  ;;  %366 = vmatprep.subr.bf16.mxu1 %v385_v19  ;;  %vm299_vm3 = vcmask 15360  }
   0x3   :  { %335 = vmatprep.mubr.msk.f32.mxu0 %vm77_vm0, %v20_v1  ;;  %334 = vmatpush3.xpose.msk.msra.mxu0 %vm77_vm0, %v28_v0  ;;  %v29_v5 = vld [vmem:[%s490_s2] sm:$0xff]  ;;  %v32_v8 = vld [vmem:[%s490_s2 + $0x18] sm:$0xff]  ;;  %v34_v12 = vld [vmem:[%s490_s2 + $0x28] sm:$0xff] }
   0x4   :  { %39 = vperm.xlu0 %382, %v29_v5   ;;  %49 = vperm.xlu1 %383, %v31_v6   ;;  %v23_v9 = vld [vmem:[%s489_s1 + $0x18] sm:$0xff]  ;;  %v24_v10 = vld [vmem:[%s489_s1 + $0x20] sm:$0xff]  ;;  %v25_v13 = vld [vmem:[%s489_s1 + $0x28] sm:$0xff] }
   0x5   :  { %v33_v11 = vld [vmem:[%s490_s2 + $0x20] sm:$0xff]  ;;  %v26_v14 = vld [vmem:[%s489_s1 + $0x30] sm:$0xff]  ;;  %v36_v16 = vld [vmem:[%s490_s2 + $0x38] sm:$0xff]  ;;  %363 = vmatprep.mubr.msk.f32.mxu1 %vm386_vm1, %v387_v20 }
   0x6   :  { %336 = vmatmul.mubr.msk.f32.vlgmr.msra.gmra.mrb[0].mxu0 %vm77_vm0, %v21_v3  ;;  %v35_v15 = vld [vmem:[%s490_s2 + $0x30] sm:$0xff]  ;;  %v27_v17 = vld [vmem:[%s489_s1 + $0x38] sm:$0xff]  ;;  %v219_v18 = vld [vmem:[%s491_s4] sm:$0xff] }
   0x7   :  { %338 = vmatprep.mubr.msk.f32.mxu0 %vm77_vm0, %v22_v4  ;;  %v218_v57 = vld [vmem:[%s492_s3] sm:$0xff] }
   0x8   :  { %44 = vperm.xlu0 %382, %v30_v7   ;;  %54 = vperm.xlu1 %383, %v32_v8  }
   0xa   :  { %339 = vmatmul.mubr.msk.f32.gmra.mrb[2].mxu0 %vm77_vm0, %v23_v9 }
   0xb   :  { %341 = vmatprep.mubr.msk.f32.mxu0 %vm77_vm0, %v24_v10 }
   0xc   :  { %59 = vperm.xlu0 %382, %v33_v11   ;;  %64 = vperm.xlu1 %383, %v34_v12  }
   0xe   :  { %342 = vmatmul.mubr.msk.f32.gmra.mrb[4].mxu0 %vm77_vm0, %v25_v13 }
   0xf   :  { %344 = vmatprep.mubr.msk.f32.mxu0 %vm77_vm0, %v26_v14 }
  0x10   :  { %69 = vperm.xlu0 %382, %v35_v15   ;;  %74 = vperm.xlu1 %383, %v36_v16  }
  0x12   :  { %345 = vmatmul.mubr.msk.f32.gmra.mrb[6].mxu0 %vm77_vm0, %v27_v17 }
  0x14   :  { %222 = vperm.xlu0 %382, %v219_v18  }
  0x83   :  { %v40_v21 = vpop.permute.xlu0 %39  ;;  %v50_v22 = vpop.permute.xlu1 %49 }
  0x87   :  { %v45_v23 = vpop.permute.xlu0 %44  ;;  %v55_v24 = vpop.permute.xlu1 %54 }
  0x8b   :  { %v65_v34 = vpop.permute.xlu1 %64  ;;  %v60_v37 = vpop.permute.xlu0 %59 }
  0x8f   :  { %v75_v46 = vpop.permute.xlu1 %74  ;;  %v70_v49 = vpop.permute.xlu0 %69 }
  0x93   :  { %v223_v58 = vpop.permute.xlu0 %222 }
  0xd9   :  { %v337_v25 = vpop.f32.mrb[0].mxu0 }
  0xda   :  { %v177_v26 = vadd.f32 %v337_v25, %v45_v23  ;;  %v171_v27 = vpop.f32.mrb[1].mxu0 }
  0xdb   :  { %v172_v28 = vadd.f32 %v171_v27, %v40_v21 }
  0xdc   :  { %v211_v29 = vmax.f32 %v177_v26, 0.0 }
  0xdd   :  { %v210_v30 = vmax.f32 %v172_v28, 0.0  ;;  %v340_v31 = vpop.f32.mrb[2].mxu0 }
  0xde   :  { %v187_v32 = vadd.f32 %v340_v31, %v55_v24  ;;  %v181_v33 = vpop.f32.mrb[3].mxu0 }
  0xdf   :  { %v182_v35 = vadd.f32 %v181_v33, %v50_v22  ;;  %v367_v36 = vpack.c.bf16 %v211_v29, %v210_v30 }
  0xe0   :  { %v213_v38 = vmax.f32 %v187_v32, 0.0 }
  0xe1   :  { %v212_v39 = vmax.f32 %v182_v35, 0.0  ;;  %v343_v40 = vpop.f32.mrb[4].mxu0  ;;  %368 = vmatpush3.bf16.msra.mxu1 %v367_v36 }
  0xe2   :  { %v197_v41 = vadd.f32 %v343_v40, %v65_v34  ;;  %v191_v42 = vpop.f32.mrb[5].mxu0  ;;  %369 = vmatprep.subr.bf16.mxu1 %v385_v19 }
  0xe3   :  { %v370_v43 = vpack.c.bf16 %v213_v38, %v212_v39  ;;  %v192_v44 = vadd.f32 %v191_v42, %v60_v37 }
  0xe4   :  { %v215_v45 = vmax.f32 %v197_v41, 0.0 }
  0xe5   :  { %v214_v47 = vmax.f32 %v192_v44, 0.0  ;;  %v346_v48 = vpop.f32.mrb[6].mxu0  ;;  %371 = vmatpush3.bf16.msra.mxu1 %v370_v43 }
  0xe6   :  { %v207_v50 = vadd.f32 %v346_v48, %v75_v46  ;;  %v201_v51 = vpop.f32.mrb[7].mxu0  ;;  %372 = vmatprep.subr.bf16.mxu1 %v385_v19 }
  0xe7   :  { %v373_v52 = vpack.c.bf16 %v215_v45, %v214_v47  ;;  %v202_v53 = vadd.f32 %v201_v51, %v70_v49 }
  0xe8   :  { %v217_v54 = vmax.f32 %v207_v50, 0.0 }
  0xe9   :  { %v216_v55 = vmax.f32 %v202_v53, 0.0  ;;  %374 = vmatpush3.bf16.msra.mxu1 %v373_v52 }
  0xea   :  { %375 = vmatprep.subr.bf16.mxu1 %v385_v19 }
  0xeb   :  { %v376_v56 = vpack.c.bf16 %v217_v54, %v216_v55 }
  0xed   :  { %377 = vmatpush3.bf16.msra.mxu1 %v376_v56 }
  0xf0   :  { %364 = vmatmul.mubr.msk.f32.vlgmr.msra.gmra.mrb[0].mxu1 %vm225_vm2, %v218_v57 }
 0x1c3   :  { %v295_v59 = vpop.f32.mrb[0].mxu1 }
 0x1c4   :  { %v296_v60 = vadd.f32 %v295_v59, %v223_v58  ;;  %v365_v61 = vpop.f32.mrb[1].mxu1 }
 0x1c6   :  { %300 = vst.msk [vmem:[%s493_s5] sm:$0xff] %vm299_vm3, %v296_v60 }

</bundles_post_ra>
